<compile_context>
chip_gen: v6e
topology: v6e:2x2x1
jax: 0.10.0
libtpu: 0.0.40
codegen_flags: <defaults>
</compile_context>

<pallas_src>
import random

import jax
import jax.numpy as jnp
from jax.experimental import pallas as pl
from jax.experimental.pallas import tpu as pltpu


# ---------------------------------------------------------------------------
# Tiling selection (host side, static shape only)
# ---------------------------------------------------------------------------
_TARGET_BLOCK_BYTES = 1 << 20          # ~1 MiB per block DMA (HBM roofline knee)
_VMEM_LIMIT_BYTES = 32 * 1024 * 1024   # safe on v5e/v6e (128 MiB) and v7x (64 MiB)


def _sublane_multiple(dtype) -> int:
    # Sub-32-bit dtypes pack along sublanes: f32 -> 8, bf16 -> 16, int8 -> 32.
    itemsize = jnp.dtype(dtype).itemsize
    return max(8, 32 // itemsize)


def _pick_tiling(n: int, dtype):
    """Return (lanes, rows, block_rows) for the tiled kernel, or None."""
    lanes = 128
    if n % lanes:
        return None
    rows = n // lanes
    sub = _sublane_multiple(dtype)
    itemsize = jnp.dtype(dtype).itemsize

    # Largest block (in rows) that keeps one block <= ~1 MiB.
    max_rows = (_TARGET_BLOCK_BYTES // (lanes * itemsize)) // sub * sub
    max_rows = max(max_rows, sub)

    start = min(rows, max_rows)
    start -= start % sub
    best = None           # largest sublane-aligned divisor of rows
    best_even = None      # ... that also gives an even number of blocks
    cand = start
    while cand >= sub:
        if rows % cand == 0:
            if best is None:
                best = cand
            if (rows // cand) % 2 == 0:
                best_even = cand
                break
        cand -= sub
    if best is None:
        return None
    block_rows = best
    # Mild preference for an even block count (v7x: splits over both TCs)
    # as long as it costs at most a 2x block-size reduction.
    if best_even is not None and 2 * best_even >= best:
        block_rows = best_even
    return lanes, rows, block_rows


# ---------------------------------------------------------------------------
# Fast tiled / pipelined kernel
# ---------------------------------------------------------------------------
def _tiled_roll_kernel(params_ref, a_ref, b_ref, o_ref):
    """Write one rolled output block.

    a_ref / b_ref are the two consecutive source blocks containing the input
    window needed for this output block (coarse block shift already applied
    by the index_maps).  params_ref (SMEM): [qb, qr, qr1, r] where qb is the
    coarse block shift (consumed only by the index_maps), qr the row residual,
    qr1 = (qr + 1) % block_rows, and r the lane residual.
    """
    br, lanes = o_ref.shape
    qr = params_ref[1]
    qr1 = params_ref[2]
    r = params_ref[3]

    a = a_ref[...]
    b = b_ref[...]

    # Row (sublane) residual.  With cat = [a; b], output row i needs
    #   cat[br + i - qr]      for lanes >= r   ("hi")
    #   cat[br + i - qr - 1]  for lanes <  r   ("lo")
    # Both are expressed as dynamic sublane rolls (XLU, which has slack in a
    # mem-bound kernel) plus a per-row select; every slice stays (8,128)
    # aligned, so no hidden realignment copies.
    a_hi = pltpu.roll(a, shift=qr, axis=0)
    b_hi = pltpu.roll(b, shift=qr, axis=0)
    a_lo = pltpu.roll(a, shift=qr1, axis=0)
    b_lo = pltpu.roll(b, shift=qr1, axis=0)

    row = jax.lax.broadcasted_iota(jnp.int32, (br, lanes), 0)
    hi = jnp.where(row >= qr, b_hi, a_hi)
    lo = jnp.where(row >= qr + 1, b_lo, a_lo)

    # Lane residual: XLU lane rotate (dynamic shift) + per-lane select.
    hi_r = pltpu.roll(hi, shift=r, axis=1)
    lo_r = pltpu.roll(lo, shift=r, axis=1)
    lane = jax.lax.broadcasted_iota(jnp.int32, (br, lanes), 1)
    o_ref[...] = jnp.where(lane >= r, hi_r, lo_r)


def _tiled_roll(x2d, s_mod, rows, block_rows, lanes):
    nblocks = rows // block_rows
    blk_elems = block_rows * lanes

    qb = s_mod // blk_elems                      # block-aligned coarse shift
    qr = (s_mod // lanes) % block_rows           # row (sublane) residual
    qr1 = (qr + 1) % block_rows
    r = s_mod % lanes                            # lane residual
    params = jnp.stack([qb, qr, qr1, r]).astype(jnp.int32)

    def a_map(j, p):                             # source block (j - qb - 1) mod nblocks
        return ((j - p[0] - 1 + 2 * nblocks) % nblocks, 0)

    def b_map(j, p):                             # source block (j - qb) mod nblocks
        return ((j - p[0] + 2 * nblocks) % nblocks, 0)

    return pl.pallas_call(
        _tiled_roll_kernel,
        out_shape=jax.ShapeDtypeStruct((rows, lanes), x2d.dtype),
        grid_spec=pltpu.PrefetchScalarGridSpec(
            num_scalar_prefetch=1,               # [qb, qr, qr1, r] lands in SMEM
            grid=(nblocks,),
            in_specs=[pl.BlockSpec((block_rows, lanes), a_map),
                      pl.BlockSpec((block_rows, lanes), b_map)],
            out_specs=pl.BlockSpec((block_rows, lanes), lambda j, p: (j, 0)),
        ),
        compiler_params=pltpu.CompilerParams(
            dimension_semantics=("parallel",),   # v7x: split blocks over both TCs
            vmem_limit_bytes=_VMEM_LIMIT_BYTES),
    )(params, x2d, x2d)                          # same HBM buffer, two read views


# ---------------------------------------------------------------------------
# Compatibility path for lengths that don't factor into (8k, 128) tiles
# ---------------------------------------------------------------------------
def _fallback_roll(flat, s_mod):
    # TODO(synk): lengths that don't factor into sublane-aligned (rows, 128)
    # tiles (e.g. n=32000 -> rows=250) fall back to XLA's roll; a Pallas path
    # with a masked ragged last block is future work.  This avoids the old
    # single (1, n) block that could exceed the scoped VMEM limit.
    return jnp.roll(flat, s_mod)


# ---------------------------------------------------------------------------
# Top-level roll (jitted once per shape; shift is a dynamic scalar)
# ---------------------------------------------------------------------------
def _roll_flattened(wavform, shift):
    """torch.roll(wavform, shifts=shift) semantics (roll of the flat tensor)."""
    orig_shape = wavform.shape
    n = wavform.size
    assert 0 < n < 2 ** 31, "flattened length must fit int32 index math"
    flat = wavform.reshape(-1)
    s_mod = jnp.remainder(jnp.asarray(shift, jnp.int32), jnp.int32(n))

    tiling = _pick_tiling(n, wavform.dtype)
    if tiling is None:
        rolled = _fallback_roll(flat, s_mod)
    else:
        lanes, rows, block_rows = tiling
        rolled = _tiled_roll(flat.reshape(rows, lanes), s_mod,
                             rows, block_rows, lanes).reshape(-1)
    return rolled.reshape(orig_shape)


_roll_flattened_jit = jax.jit(_roll_flattened)


class TimeShift:
    """JAX/Pallas port of lib/wavUtils.time_shift."""

    def __init__(self, shift_limit: float, is_random: bool = True,
                 is_bidirection: bool = False) -> None:
        self.shift_limit = shift_limit
        self.is_random = is_random
        self.is_bidirection = is_bidirection

    def __call__(self, wavform: jax.Array) -> jax.Array:
        # Host-side scalar shift computation, mirroring the PyTorch forward().
        if self.is_random:
            shift_arg = int(random.random() * self.shift_limit * wavform.shape[1])
            if self.is_bidirection:
                shift_arg = int((random.random() * 2 - 1)
                                * self.shift_limit * wavform.shape[1])
        else:
            shift_arg = int(self.shift_limit * wavform.shape[1])
        # shift is passed as a dynamic scalar -> random shifts never recompile.
        return _roll_flattened_jit(wavform, shift_arg)


if __name__ == "__main__":
    key = jax.random.PRNGKey(0)
    C, T = 4, 8192                               # small (channels, time) waveform
    x = jax.random.normal(key, (C, T), dtype=jnp.float32)

    def ref_roll(arr, s):
        return jnp.roll(arr.reshape(-1), s).reshape(arr.shape)

    # lane-aligned shift (r == 0): shift = int(0.25 * 8192) = 2048
    y = jax.block_until_ready(TimeShift(0.25, is_random=False)(x))
    assert y.shape == x.shape and y.dtype == x.dtype
    assert jnp.array_equal(y, ref_roll(x, 2048)), "aligned-shift mismatch"

    # unaligned positive shift (exercises the lane-residual path + roll sign): 81
    y = jax.block_until_ready(TimeShift(81 / T, is_random=False)(x))
    assert jnp.array_equal(y, ref_roll(x, 81)), "unaligned-shift mismatch"

    # negative (left) shift: int(-0.1 * 8192) = -819 (crosses a block boundary)
    y = jax.block_until_ready(TimeShift(-0.1, is_random=False)(x))
    assert jnp.array_equal(y, ref_roll(x, int(-0.1 * T))), "left-shift mismatch"

    # random / bidirectional paths (shift is dynamic -> no retrace), just run
    jax.block_until_ready(TimeShift(0.3, is_random=True)(x))
    jax.block_until_ready(TimeShift(0.3, is_random=True, is_bidirection=True)(x))

    print("KERNEL_OK")
</pallas_src>

<mosaic_0001>
module attributes {stable_mosaic.version = 11 : i64} {
  func.func @_tiled_roll_kernel(%arg0: i32, %arg1: memref<4xi32, #tpu.memory_space<smem>>, %arg2: memref<128x128xf32, #tpu.memory_space<vmem>>, %arg3: memref<128x128xf32, #tpu.memory_space<vmem>>, %arg4: memref<128x128xf32, #tpu.memory_space<vmem>>) attributes {dimension_semantics = [#tpu.dimension_semantics<parallel>], iteration_bounds = array<i64: 2>, scalar_prefetch = 1 : i64, scratch_operands = 0 : i64, tpu.core_type = #tpu.core_type<tc>, window_params = [{transform_indices = @transform_0, window_bounds = array<i64: 128, 128>}, {transform_indices = @transform_1, window_bounds = array<i64: 128, 128>}, {transform_indices = @transform_2, window_bounds = array<i64: 128, 128>}]} {
    %c1 = arith.constant 1 : index
    %0 = memref.load %arg1[%c1] : memref<4xi32, #tpu.memory_space<smem>>
    %c2 = arith.constant 2 : index
    %1 = memref.load %arg1[%c2] : memref<4xi32, #tpu.memory_space<smem>>
    %c3 = arith.constant 3 : index
    %2 = memref.load %arg1[%c3] : memref<4xi32, #tpu.memory_space<smem>>
    %c0 = arith.constant 0 : index
    %c0_0 = arith.constant 0 : index
    %3 = vector.load %arg2[%c0, %c0_0] : memref<128x128xf32, #tpu.memory_space<vmem>>, vector<128x128xf32>
    %c0_1 = arith.constant 0 : index
    %c0_2 = arith.constant 0 : index
    %4 = vector.load %arg3[%c0_1, %c0_2] : memref<128x128xf32, #tpu.memory_space<vmem>>, vector<128x128xf32>
    %5 = tpu.dynamic_rotate %3 by %0 dim 0 : vector<128x128xf32>, i32 -> vector<128x128xf32>
    %6 = tpu.dynamic_rotate %4 by %0 dim 0 : vector<128x128xf32>, i32 -> vector<128x128xf32>
    %7 = tpu.dynamic_rotate %3 by %1 dim 0 : vector<128x128xf32>, i32 -> vector<128x128xf32>
    %8 = tpu.dynamic_rotate %4 by %1 dim 0 : vector<128x128xf32>, i32 -> vector<128x128xf32>
    %9 = tpu.iota {dimensions = array<i32: 0>} : vector<128x128xi32>
    %10 = vector.broadcast %0 : i32 to vector<128x128xi32>
    %11 = arith.cmpi sge, %9, %10 : vector<128x128xi32>
    %12 = arith.select %11, %6, %5 : vector<128x128xi1>, vector<128x128xf32>
    %c1_i32 = arith.constant 1 : i32
    %13 = arith.addi %0, %c1_i32 : i32
    %14 = vector.broadcast %13 : i32 to vector<128x128xi32>
    %15 = arith.cmpi sge, %9, %14 : vector<128x128xi32>
    %16 = arith.select %15, %8, %7 : vector<128x128xi1>, vector<128x128xf32>
    %17 = tpu.dynamic_rotate %12 by %2 dim 1 : vector<128x128xf32>, i32 -> vector<128x128xf32>
    %18 = tpu.dynamic_rotate %16 by %2 dim 1 : vector<128x128xf32>, i32 -> vector<128x128xf32>
    %19 = tpu.iota {dimensions = array<i32: 1>} : vector<128x128xi32>
    %20 = vector.broadcast %2 : i32 to vector<128x128xi32>
    %21 = arith.cmpi sge, %19, %20 : vector<128x128xi32>
    %22 = arith.select %21, %17, %18 : vector<128x128xi1>, vector<128x128xf32>
    %c0_3 = arith.constant 0 : index
    %c0_4 = arith.constant 0 : index
    %23 = vector.load %arg4[%c0_3, %c0_4] : memref<128x128xf32, #tpu.memory_space<vmem>>, vector<128x128xf32>
    tpu.vector_store %arg4[%c0_3, %c0_4], %22 {strides = array<i32>} : memref<128x128xf32, #tpu.memory_space<vmem>>, vector<128x128xf32>,
    return
  }
  func.func @transform_0(%arg0: i32, %arg1: memref<4xi32, #tpu.memory_space<smem>>) -> (i32, i32) {
    %c0 = arith.constant 0 : index
    %0 = memref.load %arg1[%c0] : memref<4xi32, #tpu.memory_space<smem>>
    %1 = arith.subi %arg0, %0 : i32
    %c1_i32 = arith.constant 1 : i32
    %2 = arith.subi %1, %c1_i32 : i32
    %c4_i32 = arith.constant 4 : i32
    %3 = arith.addi %2, %c4_i32 : i32
    %c2_i32 = arith.constant 2 : i32
    %c0_i32 = arith.constant 0 : i32
    %4 = arith.cmpi eq, %c2_i32, %c0_i32 : i32
    %c1_i32_0 = arith.constant 1 : i32
    %5 = arith.select %4, %c1_i32_0, %c2_i32 : i32
    %6 = arith.remsi %3, %5 : i32
    %c0_i32_1 = arith.constant 0 : i32
    %7 = arith.cmpi ne, %6, %c0_i32_1 : i32
    %c0_i32_2 = arith.constant 0 : i32
    %8 = arith.cmpi slt, %6, %c0_i32_2 : i32
    %c0_i32_3 = arith.constant 0 : i32
    %9 = arith.cmpi slt, %5, %c0_i32_3 : i32
    %10 = arith.xori %8, %9 : i1
    %11 = arith.andi %10, %7 : i1
    %12 = arith.addi %6, %5 : i32
    %13 = arith.select %11, %12, %6 : i32
    %c0_i32_4 = arith.constant 0 : i32
    %c0_i32_5 = arith.constant 0 : i32
    return %13, %c0_i32_4 : i32, i32
  }
  func.func @transform_1(%arg0: i32, %arg1: memref<4xi32, #tpu.memory_space<smem>>) -> (i32, i32) {
    %c0 = arith.constant 0 : index
    %0 = memref.load %arg1[%c0] : memref<4xi32, #tpu.memory_space<smem>>
    %1 = arith.subi %arg0, %0 : i32
    %c4_i32 = arith.constant 4 : i32
    %2 = arith.addi %1, %c4_i32 : i32
    %c2_i32 = arith.constant 2 : i32
    %c0_i32 = arith.constant 0 : i32
    %3 = arith.cmpi eq, %c2_i32, %c0_i32 : i32
    %c1_i32 = arith.constant 1 : i32
    %4 = arith.select %3, %c1_i32, %c2_i32 : i32
    %5 = arith.remsi %2, %4 : i32
    %c0_i32_0 = arith.constant 0 : i32
    %6 = arith.cmpi ne, %5, %c0_i32_0 : i32
    %c0_i32_1 = arith.constant 0 : i32
    %7 = arith.cmpi slt, %5, %c0_i32_1 : i32
    %c0_i32_2 = arith.constant 0 : i32
    %8 = arith.cmpi slt, %4, %c0_i32_2 : i32
    %9 = arith.xori %7, %8 : i1
    %10 = arith.andi %9, %6 : i1
    %11 = arith.addi %5, %4 : i32
    %12 = arith.select %10, %11, %5 : i32
    %c0_i32_3 = arith.constant 0 : i32
    %c0_i32_4 = arith.constant 0 : i32
    return %12, %c0_i32_3 : i32, i32
  }
  func.func @transform_2(%arg0: i32, %arg1: memref<4xi32, #tpu.memory_space<smem>>) -> (i32, i32) {
    %c0_i32 = arith.constant 0 : i32
    %c0_i32_0 = arith.constant 0 : i32
    return %arg0, %c0_i32 : i32, i32
  }
}

</mosaic_0001>

<bundles_post_ra>
// kernel: _roll_flattened.1
= control target key start
LH: loop header
LB: loop body
LE: loop exit
PB: predicated region body
PF: predicated region fallthrough
CT: control target
= control target key end

     0   :  { %s2948_s0 = inlined_call_operand.vmem [shape: s32[4], index: 0, kind: input, shape index: {}]   ;;  %s2949_s1 = inlined_call_operand.vmem [shape: f32[256,128], index: 1, kind: input, shape index: {}, may-alias: {1,2}]   ;;  %s2950_s2 = inlined_call_operand.vmem [shape: f32[256,128], index: 2, kind: input, shape index: {}, may-alias: {1,2}]   ;;  %s2951_s3 = inlined_call_operand.vmem [shape: f32[256,128], index: 3, kind: output, shape index: {}]  }
   0x1   :  { %s8_s14 = sshll.u32 %s2948_s0, 4  ;;  %s9_s14 = int_to_ptr.vmem [resolvable:$true] %s8_s14 }
   0x2   :  { %s1202_s15 = scalar_lea.vmem %s9_s14, 16  ;;  %p1207_p1 = scmp.lt.s32.totalorder %s9_s14, %s9_s14 }
   0x3   :  { %p1203_p0 = scmp.ne.s32.totalorder %s9_s14, %s1202_s15  ;;  %p1208_p2 = scmp.lt.s32.totalorder %s1202_s15, %s1202_s15 }
   0x5   :  { %p1209_p3 = por %p1208_p2, %p1207_p1 }
   0x7   :  { %p1210_p4 = pnand %p1209_p3, %p1203_p0 }
   0x9   :  { %1213 = shalt.err (!%p1210_p4)  }
   0xa   :  { %s1224_s16 = smov [#allocation3]  }
   0xb   :  { %11 = dma.vmem_to_smem %s9_s14, 16, %s1224_s16, [#allocation2] }
   0xc   :  { %1218 = dma.done.wait [#allocation2], 16 }
   0xd   :  { %1219 = vsyncadd [#allocation2], 4294967280 }
   0xe   :  { %13 = sfence }
   0xf   :  { %s1248_s17 = smov 0  }
  0x10 LB: > { %s1159_s0 = sadd.s32 4294967295, %s1222_s17   ;;  %p1175_p5 = scmp.ge.s32.totalorder %s1222_s17, 1  ;;  %s1222_s17 = sphi %s1248_s17, %s19_s17  }
  0x11   : > { %p251_p6 = scmp.lt.s32.totalorder %s1222_s17, 3 }
  0x13   : > { %p252_p7 = pnand %p1175_p5, %p251_p6 }
  0x15   : > { %255 = sbr.rel (%p252_p7) target bundleno = 295 (0x127), region = 28 }
  0x1a   : > { %s308_s18 = sld [smem:[#allocation3]]  ;;  %v2952_v0 = vlaneseq }
  0x1b   : > { %s1256_s19 = sld [smem:[#allocation3 + $0x1]] }
  0x1c   : > { %v1267_v1 = vshrl.u32 %v2952_v0, 7 }
  0x1e   : > { %v1271_v2 = vadd.s32 16, %v1267_v1  ;;  %v1274_v3 = vadd.s32 24, %v1267_v1  ;;  %v1277_v4 = vadd.s32 8, %v1267_v1  ;;  %v1280_v5 = vadd.s32 40, %v1267_v1 }
  0x1f   : > { %v1283_v6 = vadd.s32 32, %v1267_v1  ;;  %v1286_v7 = vadd.s32 56, %v1267_v1  ;;  %v1292_v9 = vadd.s32 48, %v1267_v1  ;;  %v1295_v10 = vadd.s32 72, %v1267_v1 }
  0x20   : > { %s309_s20 = ssub.s32 %s1159_s0, %s308_s18  ;;  %3029 = vst [vmem:[#allocation5_spill] sm:$0xff] %v1271_v2  ;;  %3030 = vst [vmem:[#allocation6_spill] sm:$0xff] %v1274_v3  ;;  %v1298_v11 = vadd.s32 64, %v1267_v1  ;;  %v1304_v13 = vadd.s32 88, %v1267_v1  ;;  %v1307_v14 = vadd.s32 80, %v1267_v1  ;;  %v1310_v15 = vadd.s32 104, %v1267_v1 }
  0x21   : > { %s310_s21 = sadd.s32 3, %s309_s20  ;;  %s346_s22 = sadd.s32 4, %s309_s20  ;;  %3031 = vst [vmem:[#allocation7_spill] sm:$0xff] %v1277_v4  ;;  %3032 = vst [vmem:[#allocation8_spill] sm:$0xff] %v1280_v5  ;;  %v1321_v17 = vadd.s32 96, %v1267_v1  ;;  %v1324_v18 = vadd.s32 120, %v1267_v1  ;;  %v1350_v24 = vstv %s1256_s19 }
  0x22   : > { %p311_p8 = scmp.lt.s32.totalorder %s310_s21, 0  ;;  %s312_s23 = ssub.s32 0, %s310_s21  ;;  %3033 = vst [vmem:[#allocation9_spill] sm:$0xff] %v1283_v6  ;;  %3034 = vst [vmem:[#allocation10_spill] sm:$0xff] %v1286_v7  ;;  %v1327_v19 = vadd.s32 112, %v1267_v1  ;;  %vm923_vm5 = vcmp.ge.s32.totalorder %v1267_v1, %v1350_v24  ;;  %vm925_vm6 = vcmp.ge.s32.totalorder %v1271_v2, %v1350_v24  ;;  %vm926_vm7 = vcmp.ge.s32.totalorder %v1274_v3, %v1350_v24 }
  0x23   : > { %s1176_s24 = smin.u32 %s312_s23, %s310_s21  ;;  %p347_p9 = scmp.lt.s32.totalorder %s346_s22, 0  ;;  %3035 = vst [vmem:[#allocation11_spill] sm:$0xff] %v1292_v9  ;;  %3036 = vst [vmem:[#allocation12_spill] sm:$0xff] %v1295_v10  ;;  %vm924_vm8 = vcmp.ge.s32.totalorder %v1277_v4, %v1350_v24  ;;  %vm928_vm9 = vcmp.ge.s32.totalorder %v1280_v5, %v1350_v24 }
  0x24   : > { %s314_s25 = sand.u32 1, %s1176_s24   ;;  %s348_s26 = ssub.s32 0, %s346_s22  ;;  %3037 = vst [vmem:[#allocation13_spill] sm:$0xff] %v1298_v11  ;;  %3038 = vst [vmem:[#allocation14_spill] sm:$0xff] %v1304_v13 }
  0x25   : > { %s315_s27 = ssub.s32 0, %s314_s25  ;;  %s1181_s28 = smin.u32 %s348_s26, %s346_s22  ;;  %3039 = vst [vmem:[#allocation15_spill] sm:$0xff] %v1307_v14  ;;  %3040 = vst [vmem:[#allocation16_spill] sm:$0xff] %v1310_v15 }
  0x26   : > { %s3179_s27 = smov (!%p311_p8, %s315_s27), %s314_s25  ;;  %s350_s29 = sand.u32 1, %s1181_s28   ;;  %3041 = vst [vmem:[#allocation17_spill] sm:$0xff] %v1321_v17  ;;  %3042 = vst [vmem:[#allocation18_spill] sm:$0xff] %v1324_v18 }
  0x27   : > { %s421_s30 = sand.u32 127, %s1256_s19   ;;  %p1178_p10 = scmp.lt.s32.totalorder %s3179_s27, 0  ;;  %3043 = vst [vmem:[#allocation19_spill] sm:$0xff] %v1327_v19 }
  0x28   : > { %s321_s4 = sadd.s32 2, %s3179_s27  ;;  %s351_s5 = ssub.s32 0, %s350_s29 }
  0x29   : > { %s1261_s6 = sand.u32 7, %s421_s30   ;;  %s3181_s4 = smov (!%p1178_p10, %s321_s4), %s3179_s27 }
  0x2a   : > { %s3183_s5 = smov (!%p347_p9, %s351_s5), %s350_s29  ;;  %s1179_s7 = sshll.u32 %s3181_s4, 4  ;;  %v457_v8 = vstv %s1261_s6 }
  0x2b   : > { %s1264_s8 = sshrl.u32 %s421_s30, 3  ;;  %p324_p11 = scmp.lt.s32.totalorder %s1179_s7, 31  ;;  %vm1343_vm0 = vcmp.lt.s32.totalorder %v1267_v1, %v457_v8 }
  0x2c   : > { %p1183_p12 = scmp.lt.s32.totalorder %s3183_s5, 0  ;;  %s357_s9 = sadd.s32 2, %s3183_s5 }
  0x2d   : > { %s424_s10 = ssub.s32 8, %s1261_s6  ;;  %s3185_s7 = smov (!%p324_p11, %s1179_s7), 31  ;;  %v3104_v4 = vld [vmem:[#allocation18_spill] sm:$0xff] }
  0x2e   : > { %s3187_s9 = smov (!%p1183_p12, %s357_s9), %s3183_s5  ;;  %s1180_s11 = sshll.u32 %s3185_s7, 3  ;;  %v1300_v12 = vstv %s424_s10 }
  0x2f   : > { %s477_s12 = sand.u32 1, %s1264_s8  ;;  %s1315_s15 = scalar_lea.vmem %s2949_s1, %s1180_s11 }
  0x30   : > { %s1184_s16 = sshll.u32 %s3187_s9, 4  ;;  %v1318_v16 = vstv %s477_s12  ;;  %v1334_v20 = vld [vmem:[%s1315_s15] sm:$0xff]  ;;  %v1337_v21 = vld [vmem:[%s1315_s15 + $0x8] sm:$0xff]  ;;  %v1340_v22 = vld [vmem:[%s1315_s15 + $0x10] sm:$0xff]  ;;  %s496_s20 = sand.u32 2, %s1264_s8 }
  0x31   : > { %p1329_p13 = scmp.lt.s32.totalorder %s1184_s16, 31  ;;  %3045 = vst [vmem:[#allocation20_spill] sm:$0xff] %v1334_v20  ;;  %3046 = vst [vmem:[#allocation21_spill] sm:$0xff] %v1337_v21  ;;  %vm479_vm1 = vcmp.ne.s32.totalorder %v1318_v16, 0  ;;  %v1353_v25 = vld [vmem:[%s1315_s15 + $0x18] sm:$0xff]  ;;  %v1356_v26 = vld [vmem:[%s1315_s15 + $0x20] sm:$0xff]  ;;  %v426_v28 = vrot.slane %v1334_v20, %v1300_v12  ;;  %v428_v29 = vrot.slane %v1337_v21, %v1300_v12  ;;  %v430_v30 = vrot.slane %v1340_v22, %v1300_v12 }
  0x32   : > { %3047 = vst [vmem:[#allocation22_spill] sm:$0xff] %v1340_v22  ;;  %3050 = vst [vmem:[#allocation23_spill] sm:$0xff] %v1353_v25  ;;  %v1359_v27 = vld [vmem:[%s1315_s15 + $0x28] sm:$0xff]  ;;  %v1367_v31 = vstv %s496_s20  ;;  %v1374_v32 = vld [vmem:[%s1315_s15 + $0x30] sm:$0xff]  ;;  %v432_v35 = vrot.slane %v1353_v25, %v1300_v12  ;;  %v434_v36 = vrot.slane %v1356_v26, %v1300_v12  ;;  %s515_s25 = sand.u32 4, %s1264_s8  ;;  %s534_s26 = sand.u32 8, %s1264_s8 }
  0x33   : > { %3051 = vst [vmem:[#allocation24_spill] sm:$0xff] %v1356_v26  ;;  %3052 = vst [vmem:[#allocation25_spill] sm:$0xff] %v1359_v27  ;;  %s3189_s16 = smov (!%p1329_p13, %s1184_s16), 31  ;;  %v1377_v33 = vld [vmem:[%s1315_s15 + $0x38] sm:$0xff]  ;;  %v1380_v34 = vld [vmem:[%s1315_s15 + $0x40] sm:$0xff]  ;;  %v436_v37 = vrot.slane %v1359_v27, %v1300_v12  ;;  %vm498_vm2 = vcmp.ne.s32.totalorder %v1367_v31, 0  ;;  %v438_v41 = vrot.slane %v1374_v32, %v1300_v12  ;;  %v1406_v44 = vsel %vm1343_vm0, %v428_v29, %v430_v30 }
  0x34   : > { %3053 = vst [vmem:[#allocation26_spill] sm:$0xff] %v1374_v32  ;;  %3054 = vst [vmem:[#allocation27_spill] sm:$0xff] %v1377_v33  ;;  %v1390_v38 = vld [vmem:[%s1315_s15 + $0x48] sm:$0xff]  ;;  %v1393_v39 = vld [vmem:[%s1315_s15 + $0x50] sm:$0xff]  ;;  %v440_v42 = vrot.slane %v1377_v33, %v1300_v12  ;;  %v442_v43 = vrot.slane %v1380_v34, %v1300_v12  ;;  %s1185_s21 = sshll.u32 %s3189_s16, 3  ;;  %v1601_v27 = vstv %s515_s25  ;;  %v1603_v26 = vstv %s534_s26  ;;  %s1676_s27 = sld [smem:[#allocation3 + $0x3]] }
  0x35   : > { %3055 = vst [vmem:[#allocation28_spill] sm:$0xff] %v1380_v34  ;;  %3056 = vst [vmem:[#allocation29_spill] sm:$0xff] %v1390_v38  ;;  %v1396_v40 = vld [vmem:[%s1315_s15 + $0x58] sm:$0xff]  ;;  %v1410_v45 = vld [vmem:[%s1315_s15 + $0x60] sm:$0xff]  ;;  %v444_v48 = vrot.slane %v1390_v38, %v1300_v12  ;;  %v446_v49 = vrot.slane %v1393_v39, %v1300_v12  ;;  %v1426_v51 = vsel %vm1343_vm0, %v434_v36, %v436_v37  ;;  %s1444_s24 = scalar_lea.vmem %s2950_s2, %s1185_s21  ;;  %vm517_vm3 = vcmp.ne.s32.totalorder %v1601_v27, 0  ;;  %s1842_s29 = sld [smem:[#allocation3 + $0x2]] }
  0x36   : > { %3057 = vst [vmem:[#allocation30_spill] sm:$0xff] %v1393_v39  ;;  %3058 = vst [vmem:[#allocation31_spill] sm:$0xff] %v1396_v40  ;;  %v1413_v46 = vld [vmem:[%s1315_s15 + $0x68] sm:$0xff]  ;;  %v1416_v47 = vld [vmem:[%s1315_s15 + $0x70] sm:$0xff]  ;;  %v448_v50 = vrot.slane %v1396_v40, %v1300_v12  ;;  %v450_v53 = vrot.slane %v1410_v45, %v1300_v12  ;;  %v1439_v56 = vsel %vm1343_vm0, %v440_v42, %v442_v43  ;;  %vm536_vm4 = vcmp.ne.s32.totalorder %v1603_v26, 0  ;;  %s955_s11 = sadd.s32 1, %s1256_s19 }
  0x37   : > { %3059 = vst [vmem:[#allocation32_spill] sm:$0xff] %v1410_v45  ;;  %3060 = vst [vmem:[#allocation33_spill] sm:$0xff] %v1413_v46  ;;  %v1429_v52 = vld [vmem:[%s1315_s15 + $0x78] sm:$0xff]  ;;  %v452_v54 = vrot.slane %v1413_v46, %v1300_v12  ;;  %v454_v55 = vrot.slane %v1416_v47, %v1300_v12  ;;  %v1454_v59 = vsel %vm1343_vm0, %v444_v48, %v446_v49  ;;  %v1551_v0 = vld [vmem:[%s1444_s24 + $0x20] sm:$0xff]  ;;  %s1186_s19 = sshll.u32 %s1159_s0, 4 }
  0x38   : > { %3061 = vst [vmem:[#allocation34_spill] sm:$0xff] %v1416_v47  ;;  %3062 = vst [vmem:[#allocation35_spill] sm:$0xff] %v1429_v52  ;;  %v456_v57 = vrot.slane %v1429_v52, %v1300_v12  ;;  %v1450_v58 = vsel %vm1343_vm0, %v446_v49, %v448_v50  ;;  %v1458_v60 = vsel %vm1343_vm0, %v442_v43, %v444_v48  ;;  %v1554_v52 = vld [vmem:[%s1444_s24 + $0x28] sm:$0xff]  ;;  %v1557_v47 = vld [vmem:[%s1444_s24 + $0x30] sm:$0xff]  ;;  %p381_p0 = scmp.lt.s32.totalorder %s1186_s19, 31 }
  0x39   : > { %v1462_v61 = vsel %vm1343_vm0, %v452_v54, %v454_v55  ;;  %v1466_v62 = vsel %vm1343_vm0, %v450_v53, %v452_v54  ;;  %v1470_v63 = vsel %vm1343_vm0, %v448_v50, %v450_v53  ;;  %v1474_v8 = vsel %vm1343_vm0, %v438_v41, %v440_v42  ;;  %v1493_v42 = vld [vmem:[%s1444_s24] sm:$0xff]  ;;  %3067 = vst [vmem:[#allocation40_spill] sm:$0xff] %v1551_v0  ;;  %v1584_v38 = vld [vmem:[%s1444_s24 + $0x38] sm:$0xff]  ;;  %v1606_v25 = vld [vmem:[%s1444_s24 + $0x48] sm:$0xff] }
  0x3a   : > { %v1478_v43 = vsel %vm1343_vm0, %v454_v55, %v456_v57  ;;  %v1482_v48 = vsel %vm1343_vm0, %v436_v37, %v438_v41  ;;  %v1486_v49 = vsel %vm1343_vm0, %v432_v35, %v434_v36  ;;  %v1490_v50 = vsel %vm1343_vm0, %v430_v30, %v432_v35  ;;  %3063 = vst [vmem:[#allocation36_spill] sm:$0xff] %v1493_v42  ;;  %v1524_v35 = vld [vmem:[%s1444_s24 + $0x18] sm:$0xff]  ;;  %v1587_v34 = vld [vmem:[%s1444_s24 + $0x40] sm:$0xff]  ;;  %v1609_v22 = vld [vmem:[%s1444_s24 + $0x50] sm:$0xff]  ;;  %s1804_s28 = sand.u32 127, %s1676_s27   ;;  %s3191_s19 = smov (!%p381_p0, %s1186_s19), 31 }
  0x3b   : > { %v1497_v53 = vsel %vm1343_vm0, %v426_v28, %v428_v29  ;;  %v1501_v37 = vsel %vm1343_vm0, %v456_v57, %v426_v28  ;;  %v1507_v36 = vsel %vm479_vm1, %v1490_v50, %v1486_v49  ;;  %v1513_v30 = vsel %vm479_vm1, %v1426_v51, %v1482_v48  ;;  %v1518_v29 = vld [vmem:[%s1444_s24 + $0x8] sm:$0xff]  ;;  %v1521_v28 = vld [vmem:[%s1444_s24 + $0x10] sm:$0xff]  ;;  %3066 = vst [vmem:[#allocation39_spill] sm:$0xff] %v1524_v35  ;;  %v1612_v21 = vld [vmem:[%s1444_s24 + $0x58] sm:$0xff]  ;;  %s665_s30 = sand.u32 127, %s1842_s29   ;;  %s1187_s12 = sshll.u32 %s3191_s19, 3 }
  0x3c   : > { %3064 = vst [vmem:[#allocation37_spill] sm:$0xff] %v1518_v29  ;;  %3065 = vst [vmem:[#allocation38_spill] sm:$0xff] %v1521_v28  ;;  %v1530_v41 = vsel %vm479_vm1, %v1478_v43, %v1501_v37  ;;  %v1536_v54 = vsel %vm479_vm1, %v1497_v53, %v1406_v44  ;;  %v1542_v55 = vsel %vm479_vm1, %v1474_v8, %v1439_v56  ;;  %v1621_v18 = vld [vmem:[%s1444_s24 + $0x60] sm:$0xff]  ;;  %v1624_v17 = vld [vmem:[%s1444_s24 + $0x68] sm:$0xff]  ;;  %s2018_s4 = sand.u32 7, %s665_s30   ;;  %s2124_s6 = sshrl.u32 %s665_s30, 3 }
  0x3d   : > { %v1548_v57 = vsel %vm479_vm1, %v1458_v60, %v1454_v59  ;;  %3068 = vst [vmem:[#allocation41_spill] sm:$0xff] %v1554_v52  ;;  %3069 = vst [vmem:[#allocation42_spill] sm:$0xff] %v1557_v47  ;;  %v1563_v46 = vsel %vm479_vm1, %v1450_v58, %v1470_v63  ;;  %v1569_v45 = vsel %vm479_vm1, %v1466_v62, %v1462_v61  ;;  %v1627_v15 = vld [vmem:[%s1444_s24 + $0x70] sm:$0xff]  ;;  %v1646_v11 = vld [vmem:[%s1444_s24 + $0x78] sm:$0xff]  ;;  %s668_s5 = ssub.s32 8, %s2018_s4  ;;  %s719_s7 = sand.u32 1, %s2124_s6 }
  0x3e   : > { %v1575_v40 = vsel %vm498_vm2, %v1536_v54, %v1507_v36  ;;  %v1581_v39 = vsel %vm498_vm2, %v1513_v30, %v1542_v55  ;;  %3072 = vst [vmem:[#allocation45_spill] sm:$0xff] %v1584_v38  ;;  %3073 = vst [vmem:[#allocation46_spill] sm:$0xff] %v1587_v34  ;;  %v1593_v33 = vsel %vm498_vm2, %v1569_v45, %v1530_v41  ;;  %v3112_v26 = vld [vmem:[#allocation24_spill] sm:$0xff]  ;;  %s738_s8 = sand.u32 2, %s2124_s6  ;;  %s757_s9 = sand.u32 4, %s2124_s6 }
  0x3f   : > { %3070 = vst [vmem:[#allocation43_spill] sm:$0xff] %v1575_v40  ;;  %3071 = vst [vmem:[#allocation44_spill] sm:$0xff] %v1581_v39  ;;  %v1599_v32 = vsel %vm498_vm2, %v1548_v57, %v1563_v46  ;;  %v554_v20 = vrot.slane %v1493_v42, %v1300_v12  ;;  %v556_v19 = vrot.slane %v1518_v29, %v1300_v12  ;;  %s776_s10 = sand.u32 8, %s2124_s6  ;;  %s2895_s15 = scalar_lea.vmem %s2951_s3, %s1187_s12 }
  0x40   : > { %3074 = vst [vmem:[#allocation47_spill] sm:$0xff] %v1593_v33  ;;  %3075 = vst [vmem:[#allocation48_spill] sm:$0xff] %v1599_v32  ;;  %v1633_v14 = vsel %vm517_vm3, %v1599_v32, %v1593_v33  ;;  %v1639_v42 = vsel %vm517_vm3, %v1575_v40, %v1581_v39  ;;  %v558_v29 = vrot.slane %v1521_v28, %v1300_v12 }
  0x41   : > { %3076 = vst [vmem:[#allocation49_spill] sm:$0xff] %v1606_v25  ;;  %3077 = vst [vmem:[#allocation50_spill] sm:$0xff] %v1609_v22  ;;  %v560_v13 = vrot.slane %v1524_v35, %v1300_v12  ;;  %v537_v32 = vsel %vm536_vm4, %v1639_v42, %v1633_v14  ;;  %v562_v33 = vrot.slane %v1551_v0, %v1300_v12 }
  0x42   : > { %3078 = vst [vmem:[#allocation51_spill] sm:$0xff] %v1612_v21  ;;  %3079 = vst [vmem:[#allocation52_spill] sm:$0xff] %v1621_v18  ;;  %v564_v39 = vrot.slane %v1554_v52, %v1300_v12  ;;  %v566_v40 = vrot.slane %v1557_v47, %v1300_v12  ;;  %v568_v28 = vrot.slane %v1584_v38, %v1300_v12 }
  0x43   : > { %3080 = vst [vmem:[#allocation53_spill] sm:$0xff] %v1624_v17  ;;  %3081 = vst [vmem:[#allocation54_spill] sm:$0xff] %v1627_v15  ;;  %v570_v35 = vrot.slane %v1587_v34, %v1300_v12  ;;  %v572_v10 = vrot.slane %v1606_v25, %v1300_v12  ;;  %v576_v0 = vrot.slane %v1612_v21, %v1300_v12 }
  0x44   : > { %3082 = vst [vmem:[#allocation55_spill] sm:$0xff] %v1633_v14  ;;  %3083 = vst [vmem:[#allocation56_spill] sm:$0xff] %v1639_v42  ;;  %v574_v14 = vrot.slane %v1609_v22, %v1300_v12  ;;  %v578_v52 = vrot.slane %v1621_v18, %v1300_v12  ;;  %v580_v47 = vrot.slane %v1624_v17, %v1300_v12 }
  0x45   : > { %3084 = vst [vmem:[#allocation57_spill] sm:$0xff] %v1646_v11  ;;  %v582_v38 = vrot.slane %v1627_v15, %v1300_v12  ;;  %v584_v22 = vrot.slane %v1646_v11, %v1300_v12  ;;  %v1686_v18 = vsel %vm1343_vm0, %v570_v35, %v572_v10  ;;  %v1690_v17 = vsel %vm1343_vm0, %v568_v28, %v570_v35 }
  0x46   : > { %v1682_v21 = vsel %vm1343_vm0, %v572_v10, %v574_v14  ;;  %v1698_v25 = vsel %vm1343_vm0, %v578_v52, %v580_v47  ;;  %v1702_v12 = vsel %vm1343_vm0, %v576_v0, %v578_v52  ;;  %v1706_v10 = vsel %vm1343_vm0, %v574_v14, %v576_v0  ;;  %v3102_v2 = vld [vmem:[#allocation44_spill] sm:$0xff] }
  0x47   : > { %v1694_v15 = vsel %vm1343_vm0, %v580_v47, %v582_v38  ;;  %3086 = vst [vmem:[#allocation59_spill] sm:$0xff] %v1702_v12  ;;  %v1710_v35 = vsel %vm1343_vm0, %v582_v38, %v584_v22  ;;  %v1714_v11 = vsel %vm1343_vm0, %v566_v40, %v568_v28  ;;  %v1718_v47 = vsel %vm1343_vm0, %v564_v39, %v566_v40 }
  0x48   : > { %3085 = vst [vmem:[#allocation58_spill] sm:$0xff] %v1694_v15  ;;  %3087 = vst [vmem:[#allocation60_spill] sm:$0xff] %v1710_v35  ;;  %v1722_v52 = vsel %vm1343_vm0, %v562_v33, %v564_v39  ;;  %v596_v0 = vsel %vm1343_vm0, %v560_v13, %v562_v33  ;;  %v597_v14 = vsel %vm1343_vm0, %v558_v29, %v560_v13 }
  0x49   : > { %v598_v38 = vsel %vm1343_vm0, %v556_v19, %v558_v29  ;;  %v599_v40 = vsel %vm1343_vm0, %v554_v20, %v556_v19  ;;  %v600_v28 = vsel %vm1343_vm0, %v584_v22, %v554_v20  ;;  %v605_v34 = vsel %vm479_vm1, %v597_v14, %v596_v0 }
  0x4a   : > { %v603_v39 = vsel %vm479_vm1, %v599_v40, %v598_v38  ;;  %v607_v13 = vsel %vm479_vm1, %v1722_v52, %v1718_v47  ;;  %v601_v33 = vsel %vm479_vm1, %v1710_v35, %v600_v28  ;;  %v609_v19 = vsel %vm479_vm1, %v1714_v11, %v1690_v17 }
  0x4b   : > { %v611_v20 = vsel %vm479_vm1, %v1686_v18, %v1682_v21  ;;  %v613_v22 = vsel %vm479_vm1, %v1706_v10, %v1702_v12  ;;  %v615_v23 = vsel %vm479_vm1, %v1698_v25, %v1694_v15  ;;  %v1765_v29 = vsel %vm498_vm2, %v603_v39, %v605_v34 }
  0x4c   : > { %v1769_v42 = vsel %vm498_vm2, %v607_v13, %v609_v19  ;;  %v1773_v9 = vsel %vm498_vm2, %v611_v20, %v613_v22  ;;  %v1777_v7 = vsel %vm498_vm2, %v615_v23, %v601_v33  ;;  %v1789_v15 = vsel %vm498_vm2, %v1530_v41, %v1536_v54 }
  0x4d   : > { %v1783_v6 = vsel %vm517_vm3, %v1765_v29, %v1769_v42  ;;  %v1795_v35 = vsel %vm498_vm2, %v1507_v36, %v1513_v30  ;;  %v1801_v12 = vsel %vm517_vm3, %v1773_v9, %v1777_v7  ;;  %v1810_v41 = vsel %vm498_vm2, %v1542_v55, %v1548_v57 }
  0x4e   : > { %v1816_v36 = vsel %vm498_vm2, %v1563_v46, %v1569_v45  ;;  %v1820_v30 = vsel %vm498_vm2, %v601_v33, %v603_v39  ;;  %v649_v54 = vsel %vm536_vm4, %v1783_v6, %v1801_v12  ;;  %v1836_v45 = vsel %vm517_vm3, %v1795_v35, %v1810_v41 }
  0x4f   : > { %v1830_v55 = vsel %vm517_vm3, %v1816_v36, %v1789_v15  ;;  %v1840_v46 = vsel %vm498_vm2, %v605_v34, %v607_v13  ;;  %v939_v57 = vsel %vm923_vm5, %v649_v54, %v537_v32  ;;  %v1853_v33 = vsel %vm498_vm2, %v609_v19, %v611_v20 }
  0x50   : > { %v539_v39 = vsel %vm536_vm4, %v1836_v45, %v1830_v55  ;;  %v1857_v34 = vsel %vm498_vm2, %v613_v22, %v615_v23  ;;  %991 = vrot.lane.b32.xlu0 %v939_v57, %s1804_s28  ;;  %v1872_v13 = vsel %vm517_vm3, %v1840_v46, %v1853_v33  ;;  %v481_v19 = vsel %vm479_vm1, %v1501_v37, %v1497_v53 }
  0x51   : > { %v1866_v32 = vsel %vm517_vm3, %v1857_v34, %v1820_v30  ;;  %v483_v20 = vsel %vm479_vm1, %v1406_v44, %v1490_v50  ;;  %v485_v23 = vsel %vm479_vm1, %v1486_v49, %v1426_v51  ;;  %v487_v53 = vsel %vm479_vm1, %v1482_v48, %v1474_v8 }
  0x52   : > { %v651_v22 = vsel %vm536_vm4, %v1872_v13, %v1866_v32  ;;  %v489_v44 = vsel %vm479_vm1, %v1439_v56, %v1458_v60  ;;  %v491_v37 = vsel %vm479_vm1, %v1454_v59, %v1450_v58  ;;  %v493_v51 = vsel %vm479_vm1, %v1470_v63, %v1466_v62 }
  0x53   : > { %v941_v50 = vsel %vm925_vm6, %v651_v22, %v539_v39  ;;  %v495_v8 = vsel %vm479_vm1, %v1462_v61, %v1478_v43  ;;  %v1916_v56 = vsel %vm498_vm2, %v481_v19, %v483_v20  ;;  %v1920_v60 = vsel %vm498_vm2, %v485_v23, %v487_v53 }
  0x54   : > { %995 = vrot.lane.b32.xlu1 %v941_v50, %s1804_s28  ;;  %v1924_v58 = vsel %vm498_vm2, %v489_v44, %v491_v37  ;;  %v1928_v59 = vsel %vm498_vm2, %v493_v51, %v495_v8  ;;  %v602_v63 = vsel %vm479_vm1, %v600_v28, %v599_v40  ;;  %v604_v43 = vsel %vm479_vm1, %v598_v38, %v597_v14  ;;  %v3088_v38 = vld [vmem:[#allocation59_spill] sm:$0xff]  ;;  %v3090_v28 = vld [vmem:[#allocation58_spill] sm:$0xff] }
  0x55   : > { %v1938_v61 = vsel %vm517_vm3, %v1928_v59, %v1916_v56  ;;  %v1944_v62 = vsel %vm517_vm3, %v1920_v60, %v1924_v58  ;;  %v606_v49 = vsel %vm479_vm1, %v596_v0, %v1722_v52  ;;  %v608_v54 = vsel %vm479_vm1, %v1718_v47, %v1714_v11  ;;  %v3089_v0 = vld [vmem:[#allocation60_spill] sm:$0xff] }
  0x56   : > { %v540_v48 = vsel %vm536_vm4, %v1944_v62, %v1938_v61  ;;  %v610_v40 = vsel %vm479_vm1, %v1690_v17, %v1686_v18  ;;  %v612_v14 = vsel %vm479_vm1, %v1682_v21, %v1706_v10  ;;  %v614_v52 = vsel %vm479_vm1, %v3088_v38, %v1698_v25  ;;  %v3091_v17 = vld [vmem:[#allocation9_spill] sm:$0xff]  ;;  %v3092_v10 = vld [vmem:[#allocation10_spill] sm:$0xff] }
  0x57   : > { %v616_v11 = vsel %vm479_vm1, %v3090_v28, %v3089_v0  ;;  %v620_v47 = vsel %vm498_vm2, %v602_v63, %v604_v43  ;;  %vm927_vm10 = vcmp.ge.s32.totalorder %v3091_v17, %v1350_v24  ;;  %v624_v18 = vsel %vm498_vm2, %v606_v49, %v608_v54  ;;  %v3093_v28 = vld [vmem:[#allocation11_spill] sm:$0xff] }
  0x58   : > { %v628_v21 = vsel %vm498_vm2, %v610_v40, %v612_v14  ;;  %v632_v25 = vsel %vm498_vm2, %v614_v52, %v616_v11  ;;  %v500_v16 = vsel %vm498_vm2, %v495_v8, %v481_v19  ;;  %vm930_vm11 = vcmp.ge.s32.totalorder %v3092_v10, %v1350_v24 }
  0x59   : > { %v1994_v57 = vsel %vm517_vm3, %v632_v25, %v620_v47  ;;  %v1998_v39 = vsel %vm517_vm3, %v624_v18, %v628_v21  ;;  %v504_v22 = vsel %vm498_vm2, %v483_v20, %v485_v23  ;;  %v508_v50 = vsel %vm498_vm2, %v487_v53, %v489_v44 }
  0x5a   : > { %v652_v19 = vsel %vm536_vm4, %v1998_v39, %v1994_v57  ;;  %v512_v8 = vsel %vm498_vm2, %v491_v37, %v493_v51  ;;  %v527_v38 = vsel %vm517_vm3, %v504_v22, %v508_v50  ;;  %v618_v0 = vsel %vm498_vm2, %v616_v11, %v602_v63  ;;  %v3094_v37 = vld [vmem:[#allocation12_spill] sm:$0xff]  ;;  %v3095_v51 = vld [vmem:[#allocation13_spill] sm:$0xff] }
  0x5b   : > { %vm929_vm12 = vcmp.ge.s32.totalorder %v3093_v28, %v1350_v24  ;;  %v942_v20 = vsel %vm926_vm7, %v652_v19, %v540_v48  ;;  %v519_v23 = vsel %vm517_vm3, %v512_v8, %v500_v16  ;;  %v622_v53 = vsel %vm498_vm2, %v604_v43, %v606_v49  ;;  %v3096_v49 = vld [vmem:[#allocation14_spill] sm:$0xff]  ;;  %v3098_v19 = vld [vmem:[#allocation43_spill] sm:$0xff] }
  0x5c   : > { %v626_v44 = vsel %vm498_vm2, %v608_v54, %v610_v40  ;;  %vm932_vm13 = vcmp.ge.s32.totalorder %v3094_v37, %v1350_v24  ;;  %vm931_vm14 = vcmp.ge.s32.totalorder %v3095_v51, %v1350_v24  ;;  %997 = vrot.lane.b32.xlu1 %v942_v20, %s1804_s28  ;;  %v538_v63 = vsel %vm536_vm4, %v527_v38, %v519_v23  ;;  %v3100_v20 = vld [vmem:[#allocation16_spill] sm:$0xff] }
  0x5d   : > { %v630_v48 = vsel %vm498_vm2, %v612_v14, %v614_v52  ;;  %v642_v11 = vsel %vm517_vm3, %v622_v53, %v626_v44  ;;  %v523_v43 = vsel %vm517_vm3, %v500_v16, %v504_v22  ;;  %vm934_vm15 = vcmp.ge.s32.totalorder %v3096_v49, %v1350_v24  ;;  %v3097_v52 = vld [vmem:[#allocation15_spill] sm:$0xff] }
  0x5e   : > { %v634_v54 = vsel %vm517_vm3, %v630_v48, %v618_v0  ;;  %v531_v40 = vsel %vm517_vm3, %v508_v50, %v512_v8  ;;  %v638_v31 = vsel %vm517_vm3, %v618_v0, %v622_v53  ;;  %v646_v14 = vsel %vm517_vm3, %v626_v44, %v630_v48  ;;  %v3099_v8 = vld [vmem:[#allocation47_spill] sm:$0xff]  ;;  %v3101_v48 = vld [vmem:[#allocation48_spill] sm:$0xff] }
  0x5f   : > { %vm933_vm0 = vcmp.ge.s32.totalorder %v3097_v52, %v1350_v24  ;;  %v650_v16 = vsel %vm536_vm4, %v642_v11, %v634_v54  ;;  %v542_v22 = vsel %vm536_vm4, %v531_v40, %v523_v43  ;;  %v654_v50 = vsel %vm536_vm4, %v646_v14, %v638_v31 }
  0x60   : > { %v522_v0 = vsel %vm517_vm3, %v3099_v8, %v3098_v19  ;;  %vm936_vm1 = vcmp.ge.s32.totalorder %v3100_v20, %v1350_v24  ;;  %v940_v53 = vsel %vm924_vm8, %v650_v16, %v538_v63  ;;  %v944_v44 = vsel %vm928_vm9, %v654_v50, %v542_v22  ;;  %v3103_v8 = vld [vmem:[#allocation17_spill] sm:$0xff] }
  0x61   : > { %v530_v3 = vsel %vm517_vm3, %v3102_v2, %v3101_v48  ;;  %v637_v19 = vsel %vm517_vm3, %v1777_v7, %v1765_v29  ;;  %vm935_vm2 = vcmp.ge.s32.totalorder %v3103_v8, %v1350_v24  ;;  %vm938_vm5 = vcmp.ge.s32.totalorder %v3104_v4, %v1350_v24  ;;  %993 = vrot.lane.b32.xlu0 %v940_v53, %s1804_s28  ;;  %v3105_v29 = vld [vmem:[#allocation19_spill] sm:$0xff]  ;;  %v3108_v48 = vld [vmem:[#allocation20_spill] sm:$0xff] }
  0x62   : > { %1001 = vrot.lane.b32.xlu1 %v944_v44, %s1804_s28  ;;  %v541_v63 = vsel %vm536_vm4, %v530_v3, %v522_v0  ;;  %v645_v2 = vsel %vm517_vm3, %v1769_v42, %v1773_v9  ;;  %v525_v7 = vsel %vm517_vm3, %v1916_v56, %v1920_v60  ;;  %vm937_vm6 = vcmp.ge.s32.totalorder %v3105_v29, %v1350_v24  ;;  %v3113_v24 = vld [vmem:[#allocation25_spill] sm:$0xff] }
  0x63   : > { %v2099_v16 = vstv %s668_s5  ;;  %v653_v22 = vsel %vm536_vm4, %v645_v2, %v637_v19  ;;  %v533_v9 = vsel %vm517_vm3, %v1924_v58, %v1928_v59  ;;  %v640_v42 = vsel %vm517_vm3, %v620_v47, %v624_v18 }
  0x64   : > { %v648_v56 = vsel %vm517_vm3, %v628_v21, %v632_v25  ;;  %v943_v60 = vsel %vm927_vm10, %v653_v22, %v541_v63  ;;  %v544_v50 = vsel %vm536_vm4, %v533_v9, %v525_v7  ;;  %v524_v58 = vsel %vm517_vm3, %v1789_v15, %v1795_v35  ;;  %v3109_v63 = vld [vmem:[#allocation21_spill] sm:$0xff] }
  0x65   : > { %v656_v53 = vsel %vm536_vm4, %v648_v56, %v640_v42  ;;  %v532_v47 = vsel %vm517_vm3, %v1810_v41, %v1816_v36  ;;  %v639_v18 = vsel %vm517_vm3, %v1820_v30, %v1840_v46  ;;  %v647_v15 = vsel %vm517_vm3, %v1853_v33, %v1857_v34  ;;  %999 = vrot.lane.b32.xlu0 %v943_v60, %s1804_s28  ;;  %v3106_v46 = vld [vmem:[#allocation56_spill] sm:$0xff]  ;;  %v3107_v33 = vld [vmem:[#allocation55_spill] sm:$0xff] }
  0x66   : > { %v946_v59 = vsel %vm930_vm11, %v656_v53, %v544_v50  ;;  %v543_v35 = vsel %vm536_vm4, %v532_v47, %v524_v58  ;;  %v655_v21 = vsel %vm536_vm4, %v647_v15, %v639_v18  ;;  %v546_v41 = vsel %vm536_vm4, %v519_v23, %v527_v38  ;;  %v3114_v50 = vld [vmem:[#allocation26_spill] sm:$0xff] }
  0x67   : > { %1005 = vrot.lane.b32.xlu1 %v946_v59, %s1804_s28  ;;  %v701_v36 = vstv %s2018_s4  ;;  %v945_v30 = vsel %vm929_vm12, %v655_v21, %v543_v35  ;;  %v658_v27 = vsel %vm536_vm4, %v634_v54, %v642_v11  ;;  %v545_v34 = vsel %vm536_vm4, %v3107_v33, %v3106_v46  ;;  %v3118_v21 = vld [vmem:[#allocation30_spill] sm:$0xff]  ;;  %v3120_v46 = vld [vmem:[#allocation32_spill] sm:$0xff] }
  0x68   : > { %v657_v25 = vsel %vm536_vm4, %v1801_v12, %v1783_v6  ;;  %v948_v38 = vsel %vm932_vm13, %v658_v27, %v546_v41  ;;  %v548_v11 = vsel %vm536_vm4, %v1938_v61, %v1944_v62  ;;  %v660_v54 = vsel %vm536_vm4, %v1994_v57, %v1998_v39 }
  0x69   : > { %v947_v23 = vsel %vm931_vm14, %v657_v25, %v545_v34  ;;  %v950_v6 = vsel %vm934_vm15, %v660_v54, %v548_v11  ;;  %v547_v12 = vsel %vm536_vm4, %v1830_v55, %v1836_v45  ;;  %v659_v44 = vsel %vm536_vm4, %v1866_v32, %v1872_v13  ;;  %1003 = vrot.lane.b32.xlu0 %v945_v30, %s1804_s28  ;;  %v3119_v30 = vld [vmem:[#allocation31_spill] sm:$0xff]  ;;  %v3121_v34 = vld [vmem:[#allocation33_spill] sm:$0xff] }
  0x6a   : > { %v550_v61 = vsel %vm536_vm4, %v523_v43, %v531_v40  ;;  %v949_v62 = vsel %vm933_vm0, %v659_v44, %v547_v12  ;;  %v662_v57 = vsel %vm536_vm4, %v638_v31, %v646_v14  ;;  %v549_v55 = vsel %vm536_vm4, %v522_v0, %v530_v3  ;;  %v3123_v11 = vld [vmem:[#allocation35_spill] sm:$0xff] }
  0x6b   : > { %1009 = vrot.lane.b32.xlu1 %v948_v38, %s1804_s28  ;;  %v2200_v45 = vstv %s719_s7  ;;  %v952_v32 = vsel %vm936_vm1, %v662_v57, %v550_v61  ;;  %v661_v13 = vsel %vm536_vm4, %v637_v19, %v645_v2  ;;  %v552_v39 = vsel %vm536_vm4, %v525_v7, %v533_v9  ;;  %v3110_v7 = vld [vmem:[#allocation22_spill] sm:$0xff]  ;;  %v3111_v9 = vld [vmem:[#allocation23_spill] sm:$0xff] }
  0x6c   : > { %v664_v43 = vsel %vm536_vm4, %v640_v42, %v648_v56  ;;  %v951_v3 = vsel %vm935_vm2, %v661_v13, %v549_v55  ;;  %v551_v31 = vsel %vm536_vm4, %v524_v58, %v532_v47  ;;  %v663_v14 = vsel %vm536_vm4, %v639_v18, %v647_v15  ;;  %v3115_v58 = vld [vmem:[#allocation27_spill] sm:$0xff]  ;;  %v3116_v47 = vld [vmem:[#allocation28_spill] sm:$0xff]  ;;  %v3117_v15 = vld [vmem:[#allocation29_spill] sm:$0xff] }
  0x6d   : > { %v954_v40 = vsel %vm938_vm5, %v664_v43, %v552_v39  ;;  %v953_v0 = vsel %vm937_vm6, %v663_v14, %v551_v31  ;;  %v670_v19 = vrot.slane %v3108_v48, %v2099_v16  ;;  %v672_v2 = vrot.slane %v3109_v63, %v2099_v16  ;;  %1007 = vrot.lane.b32.xlu0 %v947_v23, %s1804_s28  ;;  %v3122_v38 = vld [vmem:[#allocation34_spill] sm:$0xff] }
  0x6e   : > { %v674_v22 = vrot.slane %v3110_v7, %v2099_v16  ;;  %v676_v42 = vrot.slane %v3111_v9, %v2099_v16  ;;  %v678_v56 = vrot.slane %v3112_v26, %v2099_v16  ;;  %v680_v60 = vrot.slane %v3113_v24, %v2099_v16 }
  0x6f   : > { %1013 = vrot.lane.b32.xlu1 %v950_v6, %s1804_s28  ;;  %vm721_vm3 = vcmp.ne.s32.totalorder %v2200_v45, 0  ;;  %v682_v53 = vrot.slane %v3114_v50, %v2099_v16  ;;  %v684_v59 = vrot.slane %v3115_v58, %v2099_v16  ;;  %v686_v18 = vrot.slane %v3116_v47, %v2099_v16 }
  0x70   : > { %v688_v35 = vrot.slane %v3117_v15, %v2099_v16  ;;  %v690_v41 = vrot.slane %v3118_v21, %v2099_v16  ;;  %v692_v27 = vrot.slane %v3119_v30, %v2099_v16  ;;  %v694_v33 = vrot.slane %v3120_v46, %v2099_v16  ;;  %v3131_v15 = vld [vmem:[#allocation36_spill] sm:$0xff]  ;;  %v3132_v21 = vld [vmem:[#allocation37_spill] sm:$0xff]  ;;  %v3133_v30 = vld [vmem:[#allocation38_spill] sm:$0xff] }
  0x71   : > { %v696_v25 = vrot.slane %v3121_v34, %v2099_v16  ;;  %v698_v23 = vrot.slane %v3122_v38, %v2099_v16  ;;  %v700_v54 = vrot.slane %v3123_v11, %v2099_v16  ;;  %vm2261_vm4 = vcmp.lt.s32.totalorder %v1267_v1, %v701_v36  ;;  %1011 = vrot.lane.b32.xlu0 %v949_v62, %s1804_s28  ;;  %v3134_v46 = vld [vmem:[#allocation39_spill] sm:$0xff]  ;;  %v3135_v34 = vld [vmem:[#allocation40_spill] sm:$0xff]  ;;  %v3136_v38 = vld [vmem:[#allocation41_spill] sm:$0xff] }
  0x72   : > { %v2265_v12 = vstv %s738_s8  ;;  %v2275_v61 = vsel %vm2261_vm4, %v692_v27, %v694_v33  ;;  %v2279_v57 = vsel %vm2261_vm4, %v690_v41, %v692_v27  ;;  %v2292_v55 = vsel %vm2261_vm4, %v688_v35, %v690_v41  ;;  %v3137_v11 = vld [vmem:[#allocation42_spill] sm:$0xff] }
  0x73   : > { %1017 = vrot.lane.b32.xlu1 %v952_v32, %s1804_s28  ;;  %v2271_v44 = vsel %vm2261_vm4, %v694_v33, %v696_v25  ;;  %vm740_vm7 = vcmp.ne.s32.totalorder %v2265_v12, 0  ;;  %v2284_v36 = vsel %vm2261_vm4, %v698_v23, %v700_v54  ;;  %v2288_v62 = vsel %vm2261_vm4, %v696_v25, %v698_v23 }
  0x74   : > { %v2296_v32 = vsel %vm2261_vm4, %v686_v18, %v688_v35  ;;  %v2301_v13 = vsel %vm2261_vm4, %v684_v59, %v686_v18  ;;  %v2305_v39 = vsel %vm2261_vm4, %v682_v53, %v684_v59  ;;  %v2309_v43 = vsel %vm2261_vm4, %v680_v60, %v682_v53 }
  0x75   : > { %v2313_v31 = vsel %vm2261_vm4, %v678_v56, %v680_v60  ;;  %v2317_v14 = vsel %vm2261_vm4, %v676_v42, %v678_v56  ;;  %v2321_v48 = vsel %vm2261_vm4, %v674_v22, %v676_v42  ;;  %v2325_v63 = vsel %vm2261_vm4, %v672_v2, %v674_v22  ;;  %1015 = vrot.lane.b32.xlu0 %v951_v3, %s1804_s28 }
  0x76   : > { %v2329_v7 = vsel %vm2261_vm4, %v670_v19, %v672_v2  ;;  %v2335_v9 = vsel %vm2261_vm4, %v700_v54, %v670_v19  ;;  %v2341_v42 = vsel %vm721_vm3, %v2325_v63, %v2321_v48  ;;  %v2347_v22 = vsel %vm721_vm3, %v2317_v14, %v2313_v31 }
  0x77   : > { %1021 = vrot.lane.b32.xlu1 %v954_v40, %s1804_s28  ;;  %v2349_v2 = vstv %s757_s9  ;;  %v2356_v3 = vsel %vm721_vm3, %v2335_v9, %v2329_v7  ;;  %v2362_v40 = vsel %vm721_vm3, %v2309_v43, %v2305_v39  ;;  %v2368_v19 = vsel %vm721_vm3, %v2301_v13, %v2296_v32 }
  0x78   : > { %v2374_v26 = vsel %vm721_vm3, %v2292_v55, %v2279_v57  ;;  %v2380_v56 = vsel %vm721_vm3, %v2275_v61, %v2271_v44  ;;  %v2386_v24 = vsel %vm721_vm3, %v2288_v62, %v2284_v36  ;;  %v2392_v60 = vsel %vm740_vm7, %v2341_v42, %v2347_v22 }
  0x79   : > { %v2398_v50 = vsel %vm740_vm7, %v2362_v40, %v2368_v19  ;;  %v2404_v53 = vsel %vm740_vm7, %v2386_v24, %v2356_v3  ;;  %v2410_v58 = vsel %vm740_vm7, %v2374_v26, %v2380_v56  ;;  %vm759_vm8 = vcmp.ne.s32.totalorder %v2349_v2, 0  ;;  %1019 = vrot.lane.b32.xlu0 %v953_v0, %s1804_s28 }
  0x7a   : > { %3126 = vst [vmem:[#allocation59_spill] sm:$0xff] %v2398_v50  ;;  %3127 = vst [vmem:[#allocation60_spill] sm:$0xff] %v2404_v53  ;;  %v2413_v59 = vstv %s776_s10  ;;  %v2420_v47 = vsel %vm759_vm8, %v2410_v58, %v2404_v53  ;;  %v2426_v18 = vsel %vm759_vm8, %v2392_v60, %v2398_v50  ;;  %v796_v35 = vrot.slane %v3131_v15, %v2099_v16  ;;  %v3138_v15 = vld [vmem:[#allocation45_spill] sm:$0xff] }
  0x7b   : > { %3128 = vst [vmem:[#allocation58_spill] sm:$0xff] %v2410_v58  ;;  %3129 = vst [vmem:[#allocation43_spill] sm:$0xff] %v2420_v47  ;;  %vm778_vm9 = vcmp.ne.s32.totalorder %v2413_v59, 0  ;;  %v798_v41 = vrot.slane %v3132_v21, %v2099_v16  ;;  %v800_v27 = vrot.slane %v3133_v30, %v2099_v16  ;;  %v802_v33 = vrot.slane %v3134_v46, %v2099_v16  ;;  %v3139_v21 = vld [vmem:[#allocation46_spill] sm:$0xff]  ;;  %v3140_v30 = vld [vmem:[#allocation49_spill] sm:$0xff] }
  0x7c   : > { %3130 = vst [vmem:[#allocation47_spill] sm:$0xff] %v2426_v18  ;;  %v780_v0 = vsel %vm778_vm9, %v2426_v18, %v2420_v47  ;;  %v804_v25 = vrot.slane %v3135_v34, %v2099_v16  ;;  %v806_v23 = vrot.slane %v3136_v38, %v2099_v16  ;;  %v808_v54 = vrot.slane %v3137_v11, %v2099_v16  ;;  %v3141_v46 = vld [vmem:[#allocation50_spill] sm:$0xff]  ;;  %v3142_v34 = vld [vmem:[#allocation51_spill] sm:$0xff]  ;;  %v3143_v38 = vld [vmem:[#allocation52_spill] sm:$0xff] }
  0x7d   : > { %v810_v29 = vrot.slane %v3138_v15, %v2099_v16  ;;  %v812_v4 = vrot.slane %v3139_v21, %v2099_v16  ;;  %v814_v8 = vrot.slane %v3140_v30, %v2099_v16  ;;  %v816_v20 = vrot.slane %v3141_v46, %v2099_v16  ;;  %v3144_v11 = vld [vmem:[#allocation53_spill] sm:$0xff]  ;;  %v3145_v15 = vld [vmem:[#allocation54_spill] sm:$0xff] }
  0x7e   : > { %v818_v52 = vrot.slane %v3142_v34, %v2099_v16  ;;  %v820_v49 = vrot.slane %v3143_v38, %v2099_v16  ;;  %v822_v51 = vrot.slane %v3144_v11, %v2099_v16  ;;  %v824_v37 = vrot.slane %v3145_v15, %v2099_v16  ;;  %v3146_v21 = vld [vmem:[#allocation57_spill] sm:$0xff] }
  0x7f   : > { %v826_v47 = vrot.slane %v3146_v21, %v2099_v16  ;;  %v832_v46 = vsel %vm2261_vm4, %v814_v8, %v816_v20  ;;  %v833_v34 = vsel %vm2261_vm4, %v812_v4, %v814_v8  ;;  %v834_v38 = vsel %vm2261_vm4, %v810_v29, %v812_v4 }
  0x80   : > { %v831_v30 = vsel %vm2261_vm4, %v816_v20, %v818_v52  ;;  %v828_v15 = vsel %vm2261_vm4, %v822_v51, %v824_v37  ;;  %v829_v16 = vsel %vm2261_vm4, %v820_v49, %v822_v51  ;;  %v830_v21 = vsel %vm2261_vm4, %v818_v52, %v820_v49 }
  0x81   : > { %v827_v11 = vsel %vm2261_vm4, %v824_v37, %v826_v47  ;;  %v835_v20 = vsel %vm2261_vm4, %v808_v54, %v810_v29  ;;  %v836_v8 = vsel %vm2261_vm4, %v806_v23, %v808_v54  ;;  %v837_v4 = vsel %vm2261_vm4, %v804_v25, %v806_v23 }
  0x82   : > { %v838_v18 = vsel %vm2261_vm4, %v802_v33, %v804_v25  ;;  %v839_v37 = vsel %vm2261_vm4, %v800_v27, %v802_v33  ;;  %v840_v51 = vsel %vm2261_vm4, %v798_v41, %v800_v27  ;;  %v841_v49 = vsel %vm2261_vm4, %v796_v35, %v798_v41 }
  0x83   : > { %v842_v52 = vsel %vm2261_vm4, %v826_v47, %v796_v35  ;;  %v846_v23 = vsel %vm721_vm3, %v840_v51, %v839_v37  ;;  %v848_v25 = vsel %vm721_vm3, %v838_v18, %v837_v4  ;;  %v850_v33 = vsel %vm721_vm3, %v836_v8, %v835_v20 }
  0x84   : > { %v844_v29 = vsel %vm721_vm3, %v842_v52, %v841_v49  ;;  %v852_v27 = vsel %vm721_vm3, %v834_v38, %v833_v34  ;;  %v854_v6 = vsel %vm721_vm3, %v832_v46, %v831_v30  ;;  %v856_v47 = vsel %vm721_vm3, %v830_v21, %v829_v16 }
  0x85   : > { %v858_v35 = vsel %vm721_vm3, %v828_v15, %v827_v11  ;;  %v2520_v54 = vsel %vm740_vm7, %v846_v23, %v848_v25  ;;  %v2524_v28 = vsel %vm740_vm7, %v850_v33, %v852_v27  ;;  %v2528_v10 = vsel %vm740_vm7, %v854_v6, %v856_v47 }
  0x86   : > { %v2516_v41 = vsel %vm740_vm7, %v858_v35, %v844_v29  ;;  %3148 = vst [vmem:[#allocation44_spill] sm:$0xff] %v2520_v54  ;;  %3149 = vst [vmem:[#allocation56_spill] sm:$0xff] %v2524_v28  ;;  %v2540_v5 = vsel %vm759_vm8, %v2520_v54, %v2524_v28  ;;  %v2542_v50 = vstv %s955_s11  ;;  %v722_v58 = vsel %vm721_vm3, %v2284_v36, %v2335_v9 }
  0x87   : > { %3147 = vst [vmem:[#allocation48_spill] sm:$0xff] %v2516_v41  ;;  %3150 = vst [vmem:[#allocation55_spill] sm:$0xff] %v2528_v10  ;;  %v2534_v17 = vsel %vm759_vm8, %v2528_v10, %v2516_v41  ;;  %v3151_v10 = vld [vmem:[#allocation7_spill] sm:$0xff]  ;;  %v724_v28 = vsel %vm721_vm3, %v2329_v7, %v2325_v63  ;;  %v726_v41 = vsel %vm721_vm3, %v2321_v48, %v2317_v14 }
  0x88   : > { %v892_v53 = vsel %vm778_vm9, %v2540_v5, %v2534_v17  ;;  %vm958_vm10 = vcmp.ge.s32.totalorder %v3151_v10, %v2542_v50  ;;  %v728_v36 = vsel %vm721_vm3, %v2313_v31, %v2309_v43  ;;  %v730_v10 = vsel %vm721_vm3, %v2305_v39, %v2301_v13 }
  0x89   : > { %v974_v54 = vsel %vm958_vm10, %v892_v53, %v780_v0  ;;  %v732_v63 = vsel %vm721_vm3, %v2296_v32, %v2292_v55  ;;  %v734_v14 = vsel %vm721_vm3, %v2279_v57, %v2275_v61  ;;  %v736_v43 = vsel %vm721_vm3, %v2271_v44, %v2288_v62 }
  0x8a   : > { %1025 = vrot.lane.b32.xlu1 %v974_v54, %s1804_s28  ;;  %v2585_v31 = vsel %vm740_vm7, %v724_v28, %v726_v41  ;;  %v2589_v13 = vsel %vm740_vm7, %v728_v36, %v730_v10  ;;  %v2593_v55 = vsel %vm740_vm7, %v736_v43, %v722_v58  ;;  %v2597_v61 = vsel %vm740_vm7, %v732_v63, %v734_v14  ;;  %v3153_v54 = vld [vmem:[#allocation5_spill] sm:$0xff] }
  0x8b   : > { %v2603_v44 = vsel %vm759_vm8, %v2585_v31, %v2589_v13  ;;  %v843_v57 = vsel %vm721_vm3, %v827_v11, %v842_v52  ;;  %v2611_v62 = vsel %vm759_vm8, %v2597_v61, %v2593_v55  ;;  %v845_v32 = vsel %vm721_vm3, %v841_v49, %v840_v51 }
  0x8c   : > { %v847_v39 = vsel %vm721_vm3, %v839_v37, %v838_v18  ;;  %v849_v48 = vsel %vm721_vm3, %v837_v4, %v836_v8  ;;  %v779_v7 = vsel %vm778_vm9, %v2603_v44, %v2611_v62  ;;  %v851_v9 = vsel %vm721_vm3, %v835_v20, %v834_v38  ;;  %v3152_v20 = vld [vmem:[#allocation6_spill] sm:$0xff] }
  0x8d   : > { %v853_v53 = vsel %vm721_vm3, %v833_v34, %v832_v46  ;;  %v855_v0 = vsel %vm721_vm3, %v831_v30, %v830_v21  ;;  %v857_v18 = vsel %vm721_vm3, %v829_v16, %v828_v15  ;;  %v863_v11 = vsel %vm740_vm7, %v845_v32, %v847_v39 }
  0x8e   : > { %v867_v8 = vsel %vm740_vm7, %v849_v48, %v851_v9  ;;  %v871_v4 = vsel %vm740_vm7, %v853_v53, %v855_v0  ;;  %v859_v38 = vsel %vm740_vm7, %v857_v18, %v843_v57  ;;  %vm957_vm11 = vcmp.ge.s32.totalorder %v1267_v1, %v2542_v50 }
  0x8f   : > { %v2641_v46 = vsel %vm759_vm8, %v863_v11, %v867_v8  ;;  %v744_v45 = vsel %vm740_vm7, %v2356_v3, %v2341_v42  ;;  %v2651_v30 = vsel %vm759_vm8, %v871_v4, %v859_v38  ;;  %v748_v34 = vsel %vm740_vm7, %v2347_v22, %v2362_v40 }
  0x90   : > { %v752_v15 = vsel %vm740_vm7, %v2368_v19, %v2374_v26  ;;  %v756_v1 = vsel %vm740_vm7, %v2380_v56, %v2386_v24  ;;  %v891_v42 = vsel %vm778_vm9, %v2641_v46, %v2651_v30  ;;  %v862_v40 = vsel %vm740_vm7, %v844_v29, %v846_v23 }
  0x91   : > { %v2671_v3 = vsel %vm759_vm8, %v756_v1, %v744_v45  ;;  %v2675_v22 = vsel %vm759_vm8, %v748_v34, %v752_v15  ;;  %v973_v19 = vsel %vm957_vm11, %v891_v42, %v779_v7  ;;  %v866_v56 = vsel %vm740_vm7, %v848_v25, %v850_v33  ;;  %v3160_v7 = vld [vmem:[#allocation56_spill] sm:$0xff] }
  0x92   : > { %v782_v26 = vsel %vm778_vm9, %v2675_v22, %v2671_v3  ;;  %v870_v24 = vsel %vm740_vm7, %v852_v27, %v854_v6  ;;  %1023 = vrot.lane.b32.xlu0 %v973_v19, %s1804_s28  ;;  %v874_v16 = vsel %vm740_vm7, %v856_v47, %v858_v35  ;;  %vm960_vm12 = vcmp.ge.s32.totalorder %v3152_v20, %v2542_v50 }
  0x93   : > { %v2692_v21 = vsel %vm759_vm8, %v866_v56, %v870_v24  ;;  %v743_v37 = vsel %vm740_vm7, %v722_v58, %v724_v28  ;;  %v2700_v51 = vsel %vm759_vm8, %v874_v16, %v862_v40  ;;  %v747_v49 = vsel %vm740_vm7, %v726_v41, %v728_v36  ;;  %v3154_v36 = vld [vmem:[#allocation60_spill] sm:$0xff] }
  0x94   : > { %v751_v52 = vsel %vm740_vm7, %v730_v10, %v732_v63  ;;  %v755_v29 = vsel %vm740_vm7, %v734_v14, %v736_v43  ;;  %v894_v23 = vsel %vm778_vm9, %v2692_v21, %v2700_v51  ;;  %v861_v25 = vsel %vm740_vm7, %v843_v57, %v845_v32  ;;  %v3155_v14 = vld [vmem:[#allocation58_spill] sm:$0xff]  ;;  %v3156_v43 = vld [vmem:[#allocation59_spill] sm:$0xff]  ;;  %v3157_v57 = vld [vmem:[#allocation44_spill] sm:$0xff] }
  0x95   : > { %v2714_v28 = vsel %vm759_vm8, %v755_v29, %v743_v37  ;;  %v2718_v58 = vsel %vm759_vm8, %v747_v49, %v751_v52  ;;  %v976_v33 = vsel %vm960_vm12, %v894_v23, %v782_v26  ;;  %v865_v6 = vsel %vm740_vm7, %v847_v39, %v849_v48  ;;  %v3158_v32 = vld [vmem:[#allocation48_spill] sm:$0xff]  ;;  %v3159_v48 = vld [vmem:[#allocation55_spill] sm:$0xff] }
  0x96   : > { %v781_v27 = vsel %vm778_vm9, %v2718_v58, %v2714_v28  ;;  %v869_v47 = vsel %vm740_vm7, %v851_v9, %v853_v53  ;;  %1029 = vrot.lane.b32.xlu1 %v976_v33, %s1804_s28  ;;  %v873_v35 = vsel %vm740_vm7, %v855_v0, %v857_v18  ;;  %vm959_vm13 = vcmp.ge.s32.totalorder %v3153_v54, %v2542_v50  ;;  %v3161_v18 = vld [vmem:[#allocation8_spill] sm:$0xff] }
  0x97   : > { %v885_v41 = vsel %vm759_vm8, %v865_v6, %v869_v47  ;;  %v765_v10 = vsel %vm759_vm8, %v3154_v36, %v2392_v60  ;;  %v877_v63 = vsel %vm759_vm8, %v873_v35, %v861_v25  ;;  %v773_v12 = vsel %vm759_vm8, %v3156_v43, %v3155_v14  ;;  %v3163_v36 = vld [vmem:[#allocation10_spill] sm:$0xff]  ;;  %v3168_v14 = vld [vmem:[#allocation13_spill] sm:$0xff]  ;;  %v3171_v43 = vld [vmem:[#allocation16_spill] sm:$0xff] }
  0x98   : > { %v880_v39 = vsel %vm759_vm8, %v3158_v32, %v3157_v57  ;;  %v888_v9 = vsel %vm759_vm8, %v3160_v7, %v3159_v48  ;;  %v893_v60 = vsel %vm778_vm9, %v885_v41, %v877_v63  ;;  %v784_v53 = vsel %vm778_vm9, %v773_v12, %v765_v10  ;;  %v3173_v32 = vld [vmem:[#allocation18_spill] sm:$0xff] }
  0x99   : > { %v896_v0 = vsel %vm778_vm9, %v888_v9, %v880_v39  ;;  %vm962_vm14 = vcmp.ge.s32.totalorder %v3161_v18, %v2542_v50  ;;  %v975_v42 = vsel %vm959_vm13, %v893_v60, %v781_v27  ;;  %v764_v26 = vsel %vm759_vm8, %v2593_v55, %v2585_v31  ;;  %v3162_v55 = vld [vmem:[#allocation9_spill] sm:$0xff]  ;;  %v3174_v60 = vld [vmem:[#allocation19_spill] sm:$0xff] }
  0x9a   : > { %v978_v19 = vsel %vm962_vm14, %v896_v0, %v784_v53  ;;  %v772_v20 = vsel %vm759_vm8, %v2589_v13, %v2597_v61  ;;  %1027 = vrot.lane.b32.xlu0 %v975_v42, %s1804_s28  ;;  %v879_v33 = vsel %vm759_vm8, %v859_v38, %v863_v11  ;;  %v887_v27 = vsel %vm759_vm8, %v867_v8, %v871_v4 }
  0x9b   : > { %1033 = vrot.lane.b32.xlu1 %v978_v19, %s1804_s28  ;;  %v783_v23 = vsel %vm778_vm9, %v772_v20, %v764_v26  ;;  %v895_v31 = vsel %vm778_vm9, %v887_v27, %v879_v33  ;;  %vm961_vm15 = vcmp.ge.s32.totalorder %v3162_v55, %v2542_v50  ;;  %v767_v13 = vsel %vm759_vm8, %v744_v45, %v748_v34 }
  0x9c   : > { %v775_v61 = vsel %vm759_vm8, %v752_v15, %v756_v1  ;;  %v977_v54 = vsel %vm961_vm15, %v895_v31, %v783_v23  ;;  %v882_v8 = vsel %vm759_vm8, %v862_v40, %v866_v56  ;;  %v890_v4 = vsel %vm759_vm8, %v870_v24, %v874_v16  ;;  %v3164_v16 = vld [vmem:[#allocation11_spill] sm:$0xff] }
  0x9d   : > { %v786_v11 = vsel %vm778_vm9, %v775_v61, %v767_v13  ;;  %v898_v38 = vsel %vm778_vm9, %v890_v4, %v882_v8  ;;  %vm964_vm0 = vcmp.ge.s32.totalorder %v3163_v36, %v2542_v50  ;;  %v766_v45 = vsel %vm759_vm8, %v743_v37, %v747_v49  ;;  %v3165_v37 = vld [vmem:[#allocation47_spill] sm:$0xff] }
  0x9e   : > { %v774_v34 = vsel %vm759_vm8, %v751_v52, %v755_v29  ;;  %1031 = vrot.lane.b32.xlu0 %v977_v54, %s1804_s28  ;;  %v980_v15 = vsel %vm964_vm0, %v898_v38, %v786_v11  ;;  %v881_v40 = vsel %vm759_vm8, %v861_v25, %v865_v6  ;;  %v889_v56 = vsel %vm759_vm8, %v869_v47, %v873_v35  ;;  %v3166_v49 = vld [vmem:[#allocation43_spill] sm:$0xff]  ;;  %v3167_v25 = vld [vmem:[#allocation12_spill] sm:$0xff] }
  0x9f   : > { %v785_v1 = vsel %vm778_vm9, %v774_v34, %v766_v45  ;;  %1037 = vrot.lane.b32.xlu1 %v980_v15, %s1804_s28  ;;  %v897_v24 = vsel %vm778_vm9, %v889_v56, %v881_v40  ;;  %vm963_vm1 = vcmp.ge.s32.totalorder %v3164_v16, %v2542_v50  ;;  %v788_v52 = vsel %vm778_vm9, %v3166_v49, %v3165_v37 }
  0xa0   : > { %v900_v29 = vsel %vm778_vm9, %v2534_v17, %v2540_v5  ;;  %v979_v2 = vsel %vm963_vm1, %v897_v24, %v785_v1  ;;  %vm966_vm2 = vcmp.ge.s32.totalorder %v3167_v25, %v2542_v50  ;;  %v787_v6 = vsel %vm778_vm9, %v2611_v62, %v2603_v44  ;;  %v3169_v44 = vld [vmem:[#allocation14_spill] sm:$0xff] }
  0xa1   : > { %v899_v47 = vsel %vm778_vm9, %v2651_v30, %v2641_v46  ;;  %v982_v35 = vsel %vm966_vm2, %v900_v29, %v788_v52  ;;  %vm965_vm5 = vcmp.ge.s32.totalorder %v3168_v14, %v2542_v50  ;;  %v790_v5 = vsel %vm778_vm9, %v2671_v3, %v2675_v22  ;;  %v3170_v22 = vld [vmem:[#allocation15_spill] sm:$0xff] }
  0xa2   : > { %v902_v17 = vsel %vm778_vm9, %v2700_v51, %v2692_v21  ;;  %1035 = vrot.lane.b32.xlu0 %v979_v2, %s1804_s28  ;;  %vm968_vm6 = vcmp.ge.s32.totalorder %v3169_v44, %v2542_v50  ;;  %v981_v62 = vsel %vm965_vm5, %v899_v47, %v787_v6  ;;  %v789_v30 = vsel %vm778_vm9, %v2714_v28, %v2718_v58 }
  0xa3   : > { %1041 = vrot.lane.b32.xlu1 %v982_v35, %s1804_s28  ;;  %v984_v46 = vsel %vm968_vm6, %v902_v17, %v790_v5  ;;  %v901_v3 = vsel %vm778_vm9, %v877_v63, %v885_v41  ;;  %vm967_vm3 = vcmp.ge.s32.totalorder %v3170_v22, %v2542_v50  ;;  %v792_v21 = vsel %vm778_vm9, %v765_v10, %v773_v12  ;;  %v3172_v10 = vld [vmem:[#allocation17_spill] sm:$0xff] }
  0xa4   : > { %v904_v51 = vsel %vm778_vm9, %v880_v39, %v888_v9  ;;  %vm970_vm4 = vcmp.ge.s32.totalorder %v3171_v43, %v2542_v50  ;;  %v983_v28 = vsel %vm967_vm3, %v901_v3, %v789_v30  ;;  %v791_v41 = vsel %vm778_vm9, %v764_v26, %v772_v20 }
  0xa5   : > { %v986_v58 = vsel %vm970_vm4, %v904_v51, %v792_v21  ;;  %v903_v63 = vsel %vm778_vm9, %v879_v33, %v887_v27  ;;  %vm969_vm7 = vcmp.ge.s32.totalorder %v3172_v10, %v2542_v50  ;;  %v794_v12 = vsel %vm778_vm9, %v767_v13, %v775_v61 }
  0xa6   : > { %1039 = vrot.lane.b32.xlu0 %v981_v62, %s1804_s28  ;;  %v906_v57 = vsel %vm778_vm9, %v882_v8, %v890_v4  ;;  %vm972_vm8 = vcmp.ge.s32.totalorder %v3173_v32, %v2542_v50  ;;  %v985_v39 = vsel %vm969_vm7, %v903_v63, %v791_v41  ;;  %v793_v7 = vsel %vm778_vm9, %v766_v45, %v774_v34 }
  0xa7   : > { %1045 = vrot.lane.b32.xlu1 %v984_v46, %s1804_s28  ;;  %v988_v48 = vsel %vm972_vm8, %v906_v57, %v794_v12  ;;  %v905_v9 = vsel %vm778_vm9, %v881_v40, %v889_v56  ;;  %vm971_vm10 = vcmp.ge.s32.totalorder %v3174_v60, %v2542_v50  ;;  %v3175_v61 = vlaneseq }
  0xa8   : > { %v987_v53 = vsel %vm971_vm10, %v905_v9, %v793_v7  ;;  %v1057_v11 = vstv %s1676_s27 }
  0xa9   : > { %v1056_v54 = vand.u32 127, %v3175_v61 }
  0xaa   : > { %1043 = vrot.lane.b32.xlu0 %v983_v28, %s1804_s28 }
  0xab   : > { %1049 = vrot.lane.b32.xlu1 %v986_v58, %s1804_s28  ;;  %vm2888_vm9 = vcmp.ge.s32.totalorder %v1056_v54, %v1057_v11 }
  0xae   : > { %1047 = vrot.lane.b32.xlu0 %v985_v39, %s1804_s28 }
  0xaf   : > { %1053 = vrot.lane.b32.xlu1 %v988_v48, %s1804_s28 }
  0xb2   : > { %1051 = vrot.lane.b32.xlu0 %v987_v53, %s1804_s28 }
  0xc2   : > { %v992_v42 = vpop.permute.xlu0 %991 }
  0xc6   : > { %v996_v0 = vpop.permute.xlu1 %995 }
  0xce   : > { %v998_v18 = vpop.permute.xlu1 %997 }
  0xd3   : > { %v994_v26 = vpop.permute.xlu0 %993 }
  0xd4   : > { %v1002_v19 = vpop.permute.xlu1 %1001 }
  0xd7   : > { %v1000_v23 = vpop.permute.xlu0 %999 }
  0xd9   : > { %v1006_v20 = vpop.permute.xlu1 %1005 }
  0xdb   : > { %v1004_v27 = vpop.permute.xlu0 %1003 }
  0xdd   : > { %v1010_v33 = vpop.permute.xlu1 %1009 }
  0xdf   : > { %v1008_v31 = vpop.permute.xlu0 %1007 }
  0xe1   : > { %v1014_v59 = vpop.permute.xlu1 %1013 }
  0xe3   : > { %v1012_v55 = vpop.permute.xlu0 %1011 }
  0xe5   : > { %v1018_v50 = vpop.permute.xlu1 %1017 }
  0xe7   : > { %v1016_v8 = vpop.permute.xlu0 %1015 }
  0xe9   : > { %v1022_v13 = vpop.permute.xlu1 %1021 }
  0xeb   : > { %v1020_v45 = vpop.permute.xlu0 %1019 }
  0xfc   : > { %v1026_v38 = vpop.permute.xlu1 %1025 }
  0xfd   : > { %v1060_v36 = vsel %vm2888_vm9, %v994_v26, %v1026_v38 }
  0xfe   : > { %1076 = vst [vmem:[%s2895_s15 + $0x8] sm:$0xff] %v1060_v36 }
 0x104   : > { %v1024_v34 = vpop.permute.xlu0 %1023 }
 0x105   : > { %v1059_v15 = vsel %vm2888_vm9, %v992_v42, %v1024_v34 }
 0x106   : > { %1075 = vst [vmem:[%s2895_s15] sm:$0xff] %v1059_v15 }
 0x108   : > { %v1030_v1 = vpop.permute.xlu1 %1029 }
 0x109   : > { %v1062_v40 = vsel %vm2888_vm9, %v998_v18, %v1030_v1 }
 0x10a   : > { %1078 = vst [vmem:[%s2895_s15 + $0x18] sm:$0xff] %v1062_v40 }
 0x10c   : > { %v1028_v56 = vpop.permute.xlu0 %1027 }
 0x10d   : > { %v1034_v24 = vpop.permute.xlu1 %1033  ;;  %v1061_v16 = vsel %vm2888_vm9, %v996_v0, %v1028_v56 }
 0x10e   : > { %v1064_v37 = vsel %vm2888_vm9, %v1002_v19, %v1034_v24  ;;  %1077 = vst [vmem:[%s2895_s15 + $0x10] sm:$0xff] %v1061_v16 }
 0x10f   : > { %1080 = vst [vmem:[%s2895_s15 + $0x28] sm:$0xff] %v1064_v37 }
 0x110   : > { %v1032_v49 = vpop.permute.xlu0 %1031 }
 0x111   : > { %v1063_v52 = vsel %vm2888_vm9, %v1000_v23, %v1032_v49  ;;  %v1038_v29 = vpop.permute.xlu1 %1037 }
 0x112   : > { %1079 = vst [vmem:[%s2895_s15 + $0x20] sm:$0xff] %v1063_v52  ;;  %v1066_v2 = vsel %vm2888_vm9, %v1006_v20, %v1038_v29 }
 0x113   : > { %1082 = vst [vmem:[%s2895_s15 + $0x38] sm:$0xff] %v1066_v2 }
 0x114   : > { %v1036_v25 = vpop.permute.xlu0 %1035 }
 0x115   : > { %v1065_v6 = vsel %vm2888_vm9, %v1004_v27, %v1036_v25  ;;  %v1042_v47 = vpop.permute.xlu1 %1041 }
 0x116   : > { %1081 = vst [vmem:[%s2895_s15 + $0x30] sm:$0xff] %v1065_v6  ;;  %v1068_v35 = vsel %vm2888_vm9, %v1010_v33, %v1042_v47 }
 0x117   : > { %1084 = vst [vmem:[%s2895_s15 + $0x48] sm:$0xff] %v1068_v35 }
 0x118   : > { %v1040_v14 = vpop.permute.xlu0 %1039 }
 0x119   : > { %v1067_v5 = vsel %vm2888_vm9, %v1008_v31, %v1040_v14  ;;  %v1046_v17 = vpop.permute.xlu1 %1045 }
 0x11a   : > { %1083 = vst [vmem:[%s2895_s15 + $0x40] sm:$0xff] %v1067_v5  ;;  %v1070_v44 = vsel %vm2888_vm9, %v1014_v59, %v1046_v17 }
 0x11b   : > { %1086 = vst [vmem:[%s2895_s15 + $0x58] sm:$0xff] %v1070_v44 }
 0x11c   : > { %v1044_v62 = vpop.permute.xlu0 %1043 }
 0x11d   : > { %v1069_v46 = vsel %vm2888_vm9, %v1012_v55, %v1044_v62  ;;  %v1050_v30 = vpop.permute.xlu1 %1049 }
 0x11e   : > { %1085 = vst [vmem:[%s2895_s15 + $0x50] sm:$0xff] %v1069_v46  ;;  %v1072_v3 = vsel %vm2888_vm9, %v1018_v50, %v1050_v30 }
 0x11f   : > { %1088 = vst [vmem:[%s2895_s15 + $0x68] sm:$0xff] %v1072_v3 }
 0x120   : > { %v1048_v22 = vpop.permute.xlu0 %1047 }
 0x121   : > { %v1071_v21 = vsel %vm2888_vm9, %v1016_v8, %v1048_v22  ;;  %v1054_v51 = vpop.permute.xlu1 %1053 }
 0x122   : > { %1087 = vst [vmem:[%s2895_s15 + $0x60] sm:$0xff] %v1071_v21  ;;  %v1074_v43 = vsel %vm2888_vm9, %v1022_v13, %v1054_v51 }
 0x123   : > { %1090 = vst [vmem:[%s2895_s15 + $0x78] sm:$0xff] %v1074_v43 }
 0x124   : > { %v1052_v28 = vpop.permute.xlu0 %1051 }
 0x125   : > { %v1073_v58 = vsel %vm2888_vm9, %v1020_v45, %v1052_v28 }
 0x126   : > { %1089 = vst [vmem:[%s2895_s15 + $0x70] sm:$0xff] %v1073_v58 }
 0x127 PF: > { %s19_s17 = sadd.s32 1, %s1222_s17  }
 0x128   : > { %p16_p1 = scmp.ge.s32.totalorder %s19_s17, 4  }
 0x12a   :  { %18 = sbr.rel (!%p16_p1) target bundleno = 16 (0x10), region = 61 }

</bundles_post_ra>
